<compile_context>
chip_gen: v6e
topology: v6e:2x2x1
jax: 0.10.0
libtpu: 0.0.40
codegen_flags: <defaults>
</compile_context>

<pallas_src>
import functools
import math

import jax
import jax.numpy as jnp
from jax.experimental import pallas as pl
from jax.experimental.pallas import tpu as pltpu

_LOG2PI = math.log(2.0 * math.pi)
_SEQ = pltpu.CompilerParams(dimension_semantics=("arbitrary",))


def _round_up(x, m):
    return (x + m - 1) // m * m


def _full_spec(shape):
    return pl.BlockSpec(shape, lambda i: (0,) * len(shape))


# ----------------------------------------------------------------------------
# One-off (non-recurrent) Pallas kernels
# ----------------------------------------------------------------------------
def _convlstm_kernel(xcol_ref, w_ref, b_ref, c_ref, h_out_ref, c_out_ref):
    # SSM ConvLSTM step: gate conv as GEMM (bf16 MXU, f32 acc) + cell update.
    hid = c_ref.shape[-1]
    gates = jnp.dot(xcol_ref[...], w_ref[...],
                    preferred_element_type=jnp.float32) + b_ref[...]
    i_g = jax.nn.sigmoid(gates[:, 0:hid])
    f_g = jax.nn.sigmoid(gates[:, hid:2 * hid])
    o_g = jax.nn.sigmoid(gates[:, 2 * hid:3 * hid])
    g_g = jnp.tanh(gates[:, 3 * hid:4 * hid])
    c_new = f_g * c_ref[...] + i_g * g_g
    h_out_ref[...] = o_g * jnp.tanh(c_new)
    c_out_ref[...] = c_new


def _static_gates_kernel(xq_ref, wq_ref, bq_ref, xp_ref, wp_ref, bp_ref,
                         gq_ref, gp_ref):
    # Hoisted, step-independent part of both gate convs (all steps at once):
    # columns are [step0 gates | step1 gates | ...], bias folded in.
    gq_ref[...] = jnp.dot(xq_ref[...], wq_ref[...],
                          preferred_element_type=jnp.float32) + bq_ref[...]
    gp_ref[...] = jnp.dot(xp_ref[...], wp_ref[...],
                          preferred_element_type=jnp.float32) + bp_ref[...]


# ----------------------------------------------------------------------------
# Fused DRAW loop kernel (grid axis = draw step, state in VMEM scratch)
# ----------------------------------------------------------------------------
def _draw_loop_kernel(sgq_ref, sgp_ref, w_hp_ref, w_hqp_ref, w_rq_ref, w_z_ref,
                      b_rq_ref, b_rp_ref, eps_ref,
                      z_ref, kl_ref, lpq_ref,
                      h_q_s, c_q_s, h_p_s, c_p_s,
                      *, n, h, w, ncl, nz):
    step = pl.program_id(0)
    r = n * h * w
    hid = ncl
    g4 = 4 * hid
    hw = h * w

    @pl.when(step == 0)
    def _init():
        for ref in (h_q_s, c_q_s, h_p_s, c_p_s):
            ref[...] = jnp.zeros_like(ref)
        kl_ref[...] = jnp.zeros_like(kl_ref)
        lpq_ref[...] = jnp.zeros_like(lpq_ref)

    # Implicit 5x5 / stride-1 / pad-2 conv on the flattened (N*H*W, C) rows:
    # out = sum over 25 taps of (row-shifted, boundary-masked input) @ W_tap.
    ridx = jax.lax.broadcasted_iota(jnp.int32, (r, 1), 0)
    ypos = (ridx // w) % h
    xpos = ridx % w
    taps = []
    for dy in range(5):
        for dx in range(5):
            off = (dy - 2) * w + (dx - 2)
            valid = ((ypos + (dy - 2) >= 0) & (ypos + (dy - 2) < h) &
                     (xpos + (dx - 2) >= 0) & (xpos + (dx - 2) < w))
            taps.append((off, valid))

    def _row_shift(x, off):
        # shifted[p, :] = x[(p + off) % r, :]; wrapped rows are masked by the
        # caller.  Static slice + concat keeps semantics unambiguous.
        s = off % r
        if s == 0:
            return x
        return jnp.concatenate([x[s:, :], x[:s, :]], axis=0)

    def conv25(x_rows, get_w, cout):
        acc = jnp.zeros((r, cout), jnp.float32)
        for k, (off, valid) in enumerate(taps):
            src = jnp.where(valid, _row_shift(x_rows, off), 0.0)
            acc = acc + jnp.dot(src.astype(jnp.bfloat16), get_w(k),
                                preferred_element_type=jnp.float32)
        return acc

    def lstm_update(gates, c_prev):
        # hid=32 < 128 lanes: these slices cost a small relayout, done once
        # per conv per step (not per tap).
        i_g = jax.nn.sigmoid(gates[:, 0:hid])
        f_g = jax.nn.sigmoid(gates[:, hid:2 * hid])
        o_g = jax.nn.sigmoid(gates[:, 2 * hid:3 * hid])
        g_g = jnp.tanh(gates[:, 3 * hid:4 * hid])
        c_new = f_g * c_prev + i_g * g_g
        return o_g * jnp.tanh(c_new), c_new

    h_p_prev = h_p_s[...]
    h_q_prev = h_q_s[...]

    # hidden_p drives rnn_q gates, rnn_p gates and reparam_p: one fused 25-tap
    # accumulation, output blocks lane-tile aligned [0:128 | 128:256 | 256:264].
    acc_hp = conv25(h_p_prev, lambda k: w_hp_ref[0, k], 2 * g4 + 2 * nz)
    # rnn_q's own recurrent hidden feeds its gate conv as well.
    acc_hq_prev = conv25(h_q_prev, lambda k: w_hqp_ref[0, k], g4)

    # ---- inference core (rnn_q) ----
    gates_q = sgq_ref[...] + acc_hp[:, 0:g4] + acc_hq_prev
    h_q_new, c_q_new = lstm_update(gates_q, c_q_s[...])
    h_q_s[...] = h_q_new
    c_q_s[...] = c_q_new

    # ---- NormalDistributionConv2d (q over h_q_new, p over h_p_prev) ----
    mq_lv = conv25(h_q_new, lambda k: w_rq_ref[k], 2 * nz) + b_rq_ref[...]
    mp_lv = acc_hp[:, 2 * g4:2 * g4 + 2 * nz] + b_rp_ref[...]
    mean_q, logvar_q = mq_lv[:, 0:nz], mq_lv[:, nz:2 * nz]
    mean_p, logvar_p = mp_lv[:, 0:nz], mp_lv[:, nz:2 * nz]

    # ---- sample + KL(q||p) + per-episode log p(z)/q(z) (2 exps/elem) ----
    eps = eps_ref[0]
    std_q = jnp.exp(0.5 * logvar_q)
    z = mean_q + std_q * eps
    z_ref[...] = z                   # concat_latents=False -> last step's z

    inv_var_p = jnp.exp(-logvar_p)
    var_q = std_q * std_q
    diff = mean_q - mean_p
    kl_elems = 0.5 * (logvar_p - logvar_q
                      + (var_q + diff * diff) * inv_var_p - 1.0)
    kl_ref[...] += jnp.sum(jnp.sum(kl_elems, axis=-1, keepdims=True),
                           axis=0, keepdims=True) * (1.0 / n)

    # (z - mean_q)^2 * exp(-logvar_q) == eps^2 by construction -> no extra exp.
    nll_q = 0.5 * (_LOG2PI + logvar_q + eps * eps)
    zdiff = z - mean_p
    nll_p = 0.5 * (_LOG2PI + logvar_p + zdiff * zdiff * inv_var_p)
    row_lpq = jnp.sum(nll_q - nll_p, axis=-1, keepdims=True)        # (r, 1)
    per_ep = jnp.concatenate(
        [jnp.sum(row_lpq[e * hw:(e + 1) * hw, :], axis=0, keepdims=True)
         for e in range(n)], axis=0)                                 # (n, 1)
    lpq_ref[...] += per_ep

    # ---- generative core (rnn_p) ----
    acc_z = conv25(z, lambda k: w_z_ref[0, k], g4)
    gates_p = sgp_ref[...] + acc_hp[:, g4:2 * g4] + acc_z
    h_p_new, c_p_new = lstm_update(gates_p, c_p_s[...])
    h_p_s[...] = h_p_new
    c_p_s[...] = c_p_new


# ----------------------------------------------------------------------------
# Wrappers
# ----------------------------------------------------------------------------
def im2col5(x_nhwc):
    """5x5, stride 1, pad 2 im2col (used once per forward for the hoisted,
    non-recurrent GEMMs only).  (N,H,W,C) -> (N*H*W, 25*C)."""
    n, h, w, c = x_nhwc.shape
    xp = jnp.pad(x_nhwc, ((0, 0), (2, 2), (2, 2), (0, 0)))
    cols = [xp[:, kh:kh + h, kw:kw + w, :] for kh in range(5) for kw in range(5)]
    return jnp.concatenate(cols, axis=-1).reshape(n * h * w, 25 * c)


def ssm_convlstm(x_nhwc, h_nhwc, c_rows, w, b):
    n, hh, ww, _ = x_nhwc.shape
    hid = c_rows.shape[-1]
    r = n * hh * ww
    kpad = w.shape[0]
    xcol = im2col5(jnp.concatenate([x_nhwc, h_nhwc], axis=-1)).astype(jnp.bfloat16)
    xcol = jnp.pad(xcol, ((0, 0), (0, kpad - xcol.shape[1])))
    return pl.pallas_call(
        _convlstm_kernel,
        grid=(1,),
        in_specs=[_full_spec((r, kpad)), _full_spec((kpad, 4 * hid)),
                  _full_spec((1, 4 * hid)), _full_spec((r, hid))],
        out_specs=[_full_spec((r, hid)), _full_spec((r, hid))],
        out_shape=[jax.ShapeDtypeStruct((r, hid), jnp.float32),
                   jax.ShapeDtypeStruct((r, hid), jnp.float32)],
        compiler_params=_SEQ,
    )(xcol, w, b, c_rows)


def static_gates(xq, wq, bq, xp_, wp, bp):
    r = xq.shape[0]
    cols = wq.shape[1]
    return pl.pallas_call(
        _static_gates_kernel,
        grid=(1,),
        in_specs=[_full_spec(xq.shape), _full_spec(wq.shape), _full_spec(bq.shape),
                  _full_spec(xp_.shape), _full_spec(wp.shape), _full_spec(bp.shape)],
        out_specs=[_full_spec((r, cols)), _full_spec((r, cols))],
        out_shape=[jax.ShapeDtypeStruct((r, cols), jnp.float32),
                   jax.ShapeDtypeStruct((r, cols), jnp.float32)],
        compiler_params=_SEQ,
    )(xq, wq, bq, xp_, wp, bp)


def draw_loop(sgq, sgp, w_hp, w_hqp, w_rq, w_z, b_rq, b_rp, eps,
              *, n, h, w, ncl, nz, steps):
    r = n * h * w
    g4 = 4 * ncl
    kern = functools.partial(_draw_loop_kernel, n=n, h=h, w=w, ncl=ncl, nz=nz)
    return pl.pallas_call(
        kern,
        grid=(steps,),
        in_specs=[
            pl.BlockSpec((r, g4), lambda i: (0, i)),                       # sgq
            pl.BlockSpec((r, g4), lambda i: (0, i)),                       # sgp
            pl.BlockSpec((1, 25, ncl, 2 * g4 + 2 * nz),
                         lambda i: (i, 0, 0, 0)),                          # w_hp
            pl.BlockSpec((1, 25, ncl, g4), lambda i: (i, 0, 0, 0)),        # w_hq (rnn_q own h)
            pl.BlockSpec((25, ncl, 2 * nz), lambda i: (0, 0, 0)),          # w_rq (shared)
            pl.BlockSpec((1, 25, nz, g4), lambda i: (i, 0, 0, 0)),         # w_z
            pl.BlockSpec((1, 2 * nz), lambda i: (0, 0)),                   # b_rq
            pl.BlockSpec((1, 2 * nz), lambda i: (0, 0)),                   # b_rp
            pl.BlockSpec((1, r, nz), lambda i: (i, 0, 0)),                 # eps
        ],
        out_specs=[
            pl.BlockSpec((r, nz), lambda i: (0, 0)),                       # z (last step)
            pl.BlockSpec((1, 1), lambda i: (0, 0)),                        # kl accumulator
            pl.BlockSpec((n, 1), lambda i: (0, 0)),                        # log p/q accumulator
        ],
        out_shape=[
            jax.ShapeDtypeStruct((r, nz), jnp.float32),
            jax.ShapeDtypeStruct((1, 1), jnp.float32),
            jax.ShapeDtypeStruct((n, 1), jnp.float32),
        ],
        scratch_shapes=[pltpu.VMEM((r, ncl), jnp.float32)] * 4,            # h_q, c_q, h_p, c_p
        compiler_params=_SEQ,
    )(sgq, sgp, w_hp, w_hqp, w_rq, w_z, b_rq, b_rp, eps)


# ----------------------------------------------------------------------------
# Parameters (deterministic, synthetic) -- weights stored bf16, biases f32.
# ----------------------------------------------------------------------------
def init_params(key, cfg):
    nz, na = cfg["nz"], cfg["n_actions"]
    nss, ncl, ncc = cfg["nc_ssm"], cfg["nc_lstm"], cfg["nc_context"]
    steps = cfg["n_draw_steps"]
    g4 = 4 * ncl
    cs = ncc + nss + na                         # static gate-conv channels

    def rnd(k, shape, scale=0.05):
        return (jax.random.normal(k, shape, jnp.float32) * scale).astype(jnp.bfloat16)

    keys = jax.random.split(key, 12)
    k_ssm = _round_up(25 * (nz + na + nss), 128)
    k_static = _round_up(25 * cs, 128)          # padded K -> no partial MXU K-tile

    w_rq = rnd(keys[0], (25, ncl, 2 * nz))      # reparam_q (shared over steps)
    w_rp = rnd(keys[1], (25, ncl, 2 * nz))      # reparam_p (shared over steps)
    wq_hp = rnd(keys[2], (steps, 25, ncl, g4))  # hidden_p -> rnn_q gates
    wp_hp = rnd(keys[3], (steps, 25, ncl, g4))  # hidden_p -> rnn_p gates (own recurrent h)
    wq_hq = rnd(keys[4], (steps, 25, ncl, g4))  # hidden_q -> rnn_q gates (own recurrent h)
    wp_z = rnd(keys[5], (steps, 25, nz, g4))    # z sample -> rnn_p gates
    # Fuse every hidden_p-driven conv into one slab, lane-tile-aligned cols.
    w_hp = jnp.concatenate(
        [wq_hp, wp_hp, jnp.broadcast_to(w_rp[None], (steps, 25, ncl, 2 * nz))],
        axis=-1)

    return {
        "ssm_w": rnd(keys[6], (k_ssm, 4 * nss)),
        "ssm_b": jnp.zeros((1, 4 * nss), jnp.float32),
        # im2col-flat static channel weights (rows past 25*cs hit zero-padded
        # input columns, i.e. are inert), all steps stacked along columns.
        "rnn_q_static_w": rnd(keys[7], (k_static, steps * g4)),
        "rnn_p_static_w": rnd(keys[8], (k_static, steps * g4)),
        "rnn_q_b": jnp.zeros((1, steps * g4), jnp.float32),
        "rnn_p_b": jnp.zeros((1, steps * g4), jnp.float32),
        "w_hp": w_hp,
        "w_hq": wq_hq,
        "w_rq": w_rq,
        "w_z": wp_z,
        "reparam_q_b": jnp.zeros((1, 2 * nz), jnp.float32),
        "reparam_p_b": jnp.zeros((1, 2 * nz), jnp.float32),
    }


# ----------------------------------------------------------------------------
# TConvDRAW forward (shared_core=False, concat_latents=False, use_ssm_context=False)
# ----------------------------------------------------------------------------
def tconvdraw_forward(params, cfg, C_t, D_t, a_tmo, cs_tmo, z_tmo, rng):
    n, h, w, _ = C_t.shape
    nz, ncl, nss = cfg["nz"], cfg["nc_lstm"], cfg["nc_ssm"]
    steps = cfg["n_draw_steps"]
    r = n * h * w

    s_tmo, c_ssm_tmo = cs_tmo

    # SSM ConvLSTM step: input = cat([z_tmo, a_tmo]) (use_ssm_context=False).
    s_t_rows, c_ssm_rows = ssm_convlstm(
        jnp.concatenate([z_tmo, a_tmo], axis=-1), s_tmo,
        c_ssm_tmo.reshape(r, nss), params["ssm_w"], params["ssm_b"])
    s_t = s_t_rows.reshape(n, h, w, nss)
    cs_t = (s_t, c_ssm_rows.reshape(n, h, w, nss))

    # Hoist the non-recurrent part of both gate convs out of the recurrence:
    # computed once for all draw steps (bias folded in).
    kpad = params["rnn_q_static_w"].shape[0]

    def prep(x_static):
        xc = im2col5(x_static).astype(jnp.bfloat16)
        return jnp.pad(xc, ((0, 0), (0, kpad - xc.shape[1])))

    sgq, sgp = static_gates(
        prep(jnp.concatenate([D_t, s_t, a_tmo], axis=-1)),
        params["rnn_q_static_w"], params["rnn_q_b"],
        prep(jnp.concatenate([C_t, s_t, a_tmo], axis=-1)),
        params["rnn_p_static_w"], params["rnn_p_b"])

    eps = jax.random.normal(rng, (steps, r, nz), jnp.float32)

    z_rows, kl, lpq = draw_loop(
        sgq, sgp, params["w_hp"], params["w_hq"], params["w_rq"], params["w_z"],
        params["reparam_q_b"], params["reparam_p_b"], eps,
        n=n, h=h, w=w, ncl=ncl, nz=nz, steps=steps)

    return {
        "z_t": z_rows.reshape(n, h, w, nz),    # concat_latents=False -> last latent
        "cs_t": cs_t,
        "kl": kl.reshape(1),
        "log_pz/qz_batchwise": lpq.reshape(n),
    }


# ----------------------------------------------------------------------------
if __name__ == "__main__":
    cfg = dict(
        im_height=16, im_channels=3, nc_enc=32, nc_lstm=32, nc_context=8,
        nc_query=0, nz=4, n_draw_steps=2, n_timesteps=8, nc_ssm=16,
        loss_type="gaussian", n_actions=3,
    )
    zh = cfg["im_height"] // 4  # z_height = 4
    N = 2

    key = jax.random.PRNGKey(0)
    k_params, k_in, k_rng = jax.random.split(key, 3)
    params = init_params(k_params, cfg)

    ks = jax.random.split(k_in, 6)
    C_t = jax.random.normal(ks[0], (N, zh, zh, cfg["nc_context"]), jnp.float32)
    D_t = jax.random.normal(ks[1], (N, zh, zh, cfg["nc_context"]), jnp.float32)
    a_tmo = jax.random.normal(ks[2], (N, zh, zh, cfg["n_actions"]), jnp.float32)
    s_tmo = jax.random.normal(ks[3], (N, zh, zh, cfg["nc_ssm"]), jnp.float32)
    c_tmo = jax.random.normal(ks[4], (N, zh, zh, cfg["nc_ssm"]), jnp.float32)
    z_tmo = jax.random.normal(ks[5], (N, zh, zh, cfg["nz"]), jnp.float32)

    out = tconvdraw_forward(params, cfg, C_t, D_t, a_tmo, (s_tmo, c_tmo), z_tmo, k_rng)
    jax.block_until_ready(out)
    assert out["z_t"].shape == (N, zh, zh, cfg["nz"])
    assert out["kl"].shape == (1,)
    assert out["log_pz/qz_batchwise"].shape == (N,)
    print("KERNEL_OK")
</pallas_src>

<mosaic_0001>
module attributes {stable_mosaic.version = 11 : i64} {
  func.func @_convlstm_kernel(%arg0: i32, %arg1: memref<32x640xbf16, #tpu.memory_space<vmem>>, %arg2: memref<640x64xbf16, #tpu.memory_space<vmem>>, %arg3: memref<1x64xf32, #tpu.memory_space<vmem>>, %arg4: memref<32x16xf32, #tpu.memory_space<vmem>>, %arg5: memref<32x16xf32, #tpu.memory_space<vmem>>, %arg6: memref<32x16xf32, #tpu.memory_space<vmem>>) attributes {dimension_semantics = [#tpu.dimension_semantics<arbitrary>], iteration_bounds = array<i64: 1>, scalar_prefetch = 0 : i64, scratch_operands = 0 : i64, tpu.core_type = #tpu.core_type<tc>, window_params = [{pipeline_mode = #tpu.pipeline_mode<synchronous>, transform_indices = @transform_0, window_bounds = array<i64: 32, 640>}, {pipeline_mode = #tpu.pipeline_mode<synchronous>, transform_indices = @transform_1, window_bounds = array<i64: 640, 64>}, {pipeline_mode = #tpu.pipeline_mode<synchronous>, transform_indices = @transform_2, window_bounds = array<i64: 1, 64>}, {pipeline_mode = #tpu.pipeline_mode<synchronous>, transform_indices = @transform_3, window_bounds = array<i64: 32, 16>}, {pipeline_mode = #tpu.pipeline_mode<synchronous>, transform_indices = @transform_4, window_bounds = array<i64: 32, 16>}, {pipeline_mode = #tpu.pipeline_mode<synchronous>, transform_indices = @transform_5, window_bounds = array<i64: 32, 16>}]} {
    %c0 = arith.constant 0 : index
    %c0_0 = arith.constant 0 : index
    %0 = vector.load %arg1[%c0, %c0_0] : memref<32x640xbf16, #tpu.memory_space<vmem>>, vector<32x640xbf16>
    %c0_1 = arith.constant 0 : index
    %c0_2 = arith.constant 0 : index
    %1 = vector.load %arg2[%c0_1, %c0_2] : memref<640x64xbf16, #tpu.memory_space<vmem>>, vector<640x64xbf16>
    %cst = arith.constant dense<0.000000e+00> : vector<32x64xf32>
    %2 = tpu.matmul %0, %1, %cst {dimension_numbers = #tpu.dot_dimension_numbers<[1], [0], [0], [1], [0, 0, 1, 1], [], []>} : vector<32x640xbf16>, vector<640x64xbf16>, vector<32x64xf32> -> vector<32x64xf32>
    %c0_3 = arith.constant 0 : index
    %c0_4 = arith.constant 0 : index
    %3 = vector.load %arg3[%c0_3, %c0_4] : memref<1x64xf32, #tpu.memory_space<vmem>>, vector<1x64xf32>
    %4 = vector.broadcast %3 : vector<1x64xf32> to vector<32x64xf32>
    %5 = arith.addf %2, %4 : vector<32x64xf32>
    %6 = vector.extract_strided_slice %5 {offsets = [0, 0], sizes = [32, 16], strides = [1, 1]} : vector<32x64xf32> to vector<32x16xf32>
    %7 = arith.negf %6 : vector<32x16xf32>
    %8 = math.exp %7 : vector<32x16xf32>
    %cst_5 = arith.constant 1.000000e+00 : f32
    %9 = vector.broadcast %cst_5 : f32 to vector<32x16xf32>
    %10 = arith.addf %9, %8 : vector<32x16xf32>
    %11 = arith.divf %9, %10 : vector<32x16xf32>
    %12 = vector.extract_strided_slice %5 {offsets = [0, 16], sizes = [32, 16], strides = [1, 1]} : vector<32x64xf32> to vector<32x16xf32>
    %13 = arith.negf %12 : vector<32x16xf32>
    %14 = math.exp %13 : vector<32x16xf32>
    %cst_6 = arith.constant 1.000000e+00 : f32
    %15 = vector.broadcast %cst_6 : f32 to vector<32x16xf32>
    %16 = arith.addf %15, %14 : vector<32x16xf32>
    %17 = arith.divf %15, %16 : vector<32x16xf32>
    %18 = vector.extract_strided_slice %5 {offsets = [0, 32], sizes = [32, 16], strides = [1, 1]} : vector<32x64xf32> to vector<32x16xf32>
    %19 = arith.negf %18 : vector<32x16xf32>
    %20 = math.exp %19 : vector<32x16xf32>
    %cst_7 = arith.constant 1.000000e+00 : f32
    %21 = vector.broadcast %cst_7 : f32 to vector<32x16xf32>
    %22 = arith.addf %21, %20 : vector<32x16xf32>
    %23 = arith.divf %21, %22 : vector<32x16xf32>
    %24 = vector.extract_strided_slice %5 {offsets = [0, 48], sizes = [32, 16], strides = [1, 1]} : vector<32x64xf32> to vector<32x16xf32>
    %25 = math.tanh %24 : vector<32x16xf32>
    %c0_8 = arith.constant 0 : index
    %c0_9 = arith.constant 0 : index
    %26 = vector.load %arg4[%c0_8, %c0_9] : memref<32x16xf32, #tpu.memory_space<vmem>>, vector<32x16xf32>
    %27 = arith.mulf %17, %26 : vector<32x16xf32>
    %28 = arith.mulf %11, %25 : vector<32x16xf32>
    %29 = arith.addf %27, %28 : vector<32x16xf32>
    %30 = math.tanh %29 : vector<32x16xf32>
    %31 = arith.mulf %23, %30 : vector<32x16xf32>
    %c0_10 = arith.constant 0 : index
    %c0_11 = arith.constant 0 : index
    %32 = vector.load %arg5[%c0_10, %c0_11] : memref<32x16xf32, #tpu.memory_space<vmem>>, vector<32x16xf32>
    tpu.vector_store %arg5[%c0_10, %c0_11], %31 {strides = array<i32>} : memref<32x16xf32, #tpu.memory_space<vmem>>, vector<32x16xf32>,
    %c0_12 = arith.constant 0 : index
    %c0_13 = arith.constant 0 : index
    %33 = vector.load %arg6[%c0_12, %c0_13] : memref<32x16xf32, #tpu.memory_space<vmem>>, vector<32x16xf32>
    tpu.vector_store %arg6[%c0_12, %c0_13], %29 {strides = array<i32>} : memref<32x16xf32, #tpu.memory_space<vmem>>, vector<32x16xf32>,
    return
  }
  func.func @transform_0(%arg0: i32) -> (i32, i32) {
    %c0_i32 = arith.constant 0 : i32
    %c0_i32_0 = arith.constant 0 : i32
    %c0_i32_1 = arith.constant 0 : i32
    return %c0_i32, %c0_i32_0 : i32, i32
  }
  func.func @transform_1(%arg0: i32) -> (i32, i32) {
    %c0_i32 = arith.constant 0 : i32
    %c0_i32_0 = arith.constant 0 : i32
    %c0_i32_1 = arith.constant 0 : i32
    return %c0_i32, %c0_i32_0 : i32, i32
  }
  func.func @transform_2(%arg0: i32) -> (i32, i32) {
    %c0_i32 = arith.constant 0 : i32
    %c0_i32_0 = arith.constant 0 : i32
    %c0_i32_1 = arith.constant 0 : i32
    return %c0_i32, %c0_i32_0 : i32, i32
  }
  func.func @transform_3(%arg0: i32) -> (i32, i32) {
    %c0_i32 = arith.constant 0 : i32
    %c0_i32_0 = arith.constant 0 : i32
    %c0_i32_1 = arith.constant 0 : i32
    return %c0_i32, %c0_i32_0 : i32, i32
  }
  func.func @transform_4(%arg0: i32) -> (i32, i32) {
    %c0_i32 = arith.constant 0 : i32
    %c0_i32_0 = arith.constant 0 : i32
    %c0_i32_1 = arith.constant 0 : i32
    return %c0_i32, %c0_i32_0 : i32, i32
  }
  func.func @transform_5(%arg0: i32) -> (i32, i32) {
    %c0_i32 = arith.constant 0 : i32
    %c0_i32_0 = arith.constant 0 : i32
    %c0_i32_1 = arith.constant 0 : i32
    return %c0_i32, %c0_i32_0 : i32, i32
  }
}

</mosaic_0001>

<bundles_post_ra>
// kernel: tpu_custom_call.1
= control target key start
LH: loop header
LB: loop body
LE: loop exit
PB: predicated region body
PF: predicated region fallthrough
CT: control target
= control target key end

     0   :  { %s955_s22 = smov 16   ;;  %vm690_vm0 = vcmask 130048   ;;  %s957_s27 = smov 96   ;;  %s1197_s1 = inlined_call_operand.vmem [shape: bf16[640,64], index: 1, kind: input, shape index: {}]   ;;  %s1198_s0 = inlined_call_operand.vmem [shape: bf16[32,640], index: 0, kind: input, shape index: {}]   ;;  %s1199_s2 = inlined_call_operand.vmem [shape: f32[1,64], index: 2, kind: input, shape index: {}]   ;;  %s1200_s3 = inlined_call_operand.vmem [shape: f32[32,16], index: 3, kind: input, shape index: {}]   ;;  %s1201_s5 = inlined_call_operand.vmem [shape: f32[32,16], index: 5, kind: output, shape index: {1}]   ;;  %s1202_s4 = inlined_call_operand.vmem [shape: f32[32,16], index: 4, kind: output, shape index: {0}]  }
   0x1   :  { %v868_v0 = vld [vmem:[%s1197_s1 + $0x78] sm:$0xff]   ;;  %v872_v4 = vld [vmem:[%s1197_s1 + $0x70] sm:$0xff]   ;;  %v876_v8 = vld [vmem:[%s1197_s1 + $0x68] sm:$0xff]  }
   0x2   :  { %v869_v1 = vld [vmem:[%s1197_s1 + $0x38] sm:$0xff]   ;;  %778 = vmatprep.subr.bf16.mxu0 %v868_v0  ;;  %v873_v5 = vld [vmem:[%s1197_s1 + $0x30] sm:$0xff]   ;;  %v877_v9 = vld [vmem:[%s1197_s1 + $0x28] sm:$0xff]  }
   0x3   :  { %v870_v2 = vld [vmem:[%s1197_s1 + $0xf8] sm:$0xff]   ;;  %779 = vmatpush3.bf16.msra.mxu0 %v869_v1  ;;  %v874_v6 = vld [vmem:[%s1197_s1 + $0xf0] sm:$0xff]   ;;  %v878_v10 = vld [vmem:[%s1197_s1 + $0xe8] sm:$0xff]  }
   0x4   :  { %v871_v3 = vld [vmem:[%s1197_s1 + $0xb8] sm:$0xff]   ;;  %806 = vmatprep.subr.bf16.mxu1 %v870_v2  ;;  %780 = vmatprep.subr.bf16.mxu0 %v872_v4  ;;  %v875_v7 = vld [vmem:[%s1197_s1 + $0xb0] sm:$0xff]   ;;  %v879_v11 = vld [vmem:[%s1197_s1 + $0xa8] sm:$0xff]  }
   0x5   :  { %807 = vmatpush3.bf16.msra.mxu1 %v871_v3  ;;  %v880_v12 = vld [vmem:[%s1197_s1 + $0x60] sm:$0xff]   ;;  %v884_v16 = vld [vmem:[%s1197_s1 + $0x58] sm:$0xff]   ;;  %v888_v20 = vld [vmem:[%s1197_s1 + $0x50] sm:$0xff]  }
   0x6   :  { %808 = vmatprep.subr.bf16.mxu1 %v874_v6  ;;  %v881_v13 = vld [vmem:[%s1197_s1 + $0x20] sm:$0xff]   ;;  %v885_v17 = vld [vmem:[%s1197_s1 + $0x18] sm:$0xff]   ;;  %v889_v21 = vld [vmem:[%s1197_s1 + $0x10] sm:$0xff]  }
   0x7   :  { %781 = vmatpush3.bf16.msra.mxu0 %v873_v5  ;;  %v882_v14 = vld [vmem:[%s1197_s1 + $0xe0] sm:$0xff]   ;;  %v886_v18 = vld [vmem:[%s1197_s1 + $0xd8] sm:$0xff]   ;;  %v890_v22 = vld [vmem:[%s1197_s1 + $0xd0] sm:$0xff]  }
   0x8   :  { %782 = vmatprep.subr.bf16.mxu0 %v876_v8  ;;  %v883_v15 = vld [vmem:[%s1197_s1 + $0xa0] sm:$0xff]   ;;  %v887_v19 = vld [vmem:[%s1197_s1 + $0x98] sm:$0xff]   ;;  %v891_v23 = vld [vmem:[%s1197_s1 + $0x90] sm:$0xff]  }
   0x9   :  { %809 = vmatpush3.bf16.msra.mxu1 %v875_v7  ;;  %v892_v24 = vld [vmem:[%s1197_s1 + $0x48] sm:$0xff]   ;;  %v896_v28 = vld [vmem:[%s1197_s1 + $0x40] sm:$0xff]   ;;  %v903_v34 = vld [vmem:[%s1197_s1 + $0x138] sm:$0xff]  }
   0xa   :  { %810 = vmatprep.subr.bf16.mxu1 %v878_v10  ;;  %v893_v25 = vld [vmem:[%s1197_s1 + $0x8] sm:$0xff]   ;;  %v897_v29 = vld [vmem:[%s1197_s1] sm:$0xff]   ;;  %v907_v37 = vld [vmem:[%s1197_s1 + $0x130] sm:$0xff]  }
   0xb   :  { %783 = vmatpush3.bf16.msra.mxu0 %v877_v9  ;;  %v894_v26 = vld [vmem:[%s1197_s1 + $0xc8] sm:$0xff]   ;;  %v898_v30 = vld [vmem:[%s1197_s1 + $0xc0] sm:$0xff]   ;;  %v910_v44 = vld [vmem:[%s1197_s1 + $0x118] sm:$0xff]  }
   0xc   :  { %784 = vmatprep.subr.bf16.mxu0 %v880_v12  ;;  %v895_v27 = vld [vmem:[%s1197_s1 + $0x88] sm:$0xff]   ;;  %v899_v31 = vld [vmem:[%s1198_s0] ss:$20 sps:$4 sm:$0xff]   ;;  %v901_v32 = vld [vmem:[%s1198_s0 + $0x4] ss:$20 sps:$4 sm:$0xff]  }
   0xd   :  { %811 = vmatpush3.bf16.msra.mxu1 %v879_v11  ;;  %v902_v33 = vld [vmem:[%s1197_s1 + $0x80] sm:$0xff]   ;;  %443 = vmatprep.mubr.bf16.mxu0 %v901_v32  ;;  %v904_v35 = vld [vmem:[%s1198_s0 + $0x8] ss:$20 sps:$4 sm:$0xff]   ;;  %v917_v46 = vld [vmem:[%s1197_s1 + $0x110] sm:$0xff]  }
   0xe   :  { %812 = vmatprep.subr.bf16.mxu1 %v882_v14  ;;  %v906_v36 = vld [vmem:[%s1198_s0 + $0xc] ss:$20 sps:$4 sm:$0xff]   ;;  %v913_v41 = vld [vmem:[%s1198_s0 + $0x28] ss:$20 sps:$4 sm:$0xff]   ;;  %v916_v43 = vld [vmem:[%s1198_s0 + $0x30] ss:$20 sps:$4 sm:$0xff]  }
   0xf   :  { %785 = vmatpush3.bf16.msra.mxu0 %v881_v13  ;;  %492 = vmatprep.mubr.bf16.mxu1 %v906_v36  ;;  %v908_v38 = vld [vmem:[%s1197_s1 + $0x128] sm:$0xff]   ;;  %v909_v39 = vld [vmem:[%s1197_s1 + $0x120] sm:$0xff]  }
  0x10   :  { %786 = vmatprep.subr.bf16.mxu0 %v884_v16  ;;  %v911_v40 = vld [vmem:[%s1198_s0 + $0x2c] ss:$20 sps:$4 sm:$0xff]   ;;  %v914_v42 = vld [vmem:[%s1198_s0 + $0x34] ss:$20 sps:$4 sm:$0xff]   ;;  %v920_v45 = vld [vmem:[%s1198_s0 + $0x10] ss:$20 sps:$4 sm:$0xff]  }
  0x11   :  { %813 = vmatpush3.bf16.msra.mxu1 %v883_v15  ;;  %v918_v47 = vld [vmem:[%s1197_s1 + $0x108] sm:$0xff]   ;;  %v919_v48 = vld [vmem:[%s1197_s1 + $0x100] sm:$0xff]  }
  0x12   :  { %814 = vmatprep.subr.bf16.mxu1 %v886_v18  ;;  %v921_v49 = vld [vmem:[%s1198_s0 + $0x38] ss:$20 sps:$4 sm:$0xff]   ;;  %v723_v3 = vld [vmem:[%s1199_s2] ss:$0 sm:$0xff]  ;;  %s954_s2 = smov 80  }
  0x13   :  { %787 = vmatpush3.bf16.msra.mxu0 %v885_v17  ;;  %v586_v32 = vld [vmem:[%s1200_s3] sm:$0xff] }
  0x14   :  { %788 = vmatprep.subr.bf16.mxu0 %v888_v20 }
  0x15   :  { %815 = vmatpush3.bf16.msra.mxu1 %v887_v19 }
  0x16   :  { %816 = vmatprep.subr.bf16.mxu1 %v890_v22 }
  0x17   :  { %789 = vmatpush3.bf16.msra.mxu0 %v889_v21 }
  0x18   :  { %790 = vmatprep.subr.bf16.mxu0 %v892_v24 }
  0x19   :  { %817 = vmatpush3.bf16.msra.mxu1 %v891_v23 }
  0x1a   :  { %818 = vmatprep.subr.bf16.mxu1 %v894_v26 }
  0x1b   :  { %791 = vmatpush3.bf16.msra.mxu0 %v893_v25 }
  0x1c   :  { %792 = vmatprep.subr.bf16.mxu0 %v896_v28 }
  0x1d   :  { %819 = vmatpush3.bf16.msra.mxu1 %v895_v27 }
  0x1e   :  { %820 = vmatprep.subr.bf16.mxu1 %v898_v30 }
  0x1f   :  { %793 = vmatpush3.bf16.msra.mxu0 %v897_v29 }
  0x20   :  { %844 = vmatprep.subr.bf16.mxu0 %v903_v34 }
  0x21   :  { %821 = vmatpush3.bf16.msra.mxu1 %v902_v33  ;;  %v589_v33 = vld [vmem:[%s1200_s3 + $0x18] sm:$0xff] }
  0x22   :  { %444 = vmatmul.mubr.bf16.vlgmr.msra.gmra.mxu0 %v899_v31  ;;  %v587_v31 = vld [vmem:[%s1200_s3 + $0x8] sm:$0xff] }
  0x23   :  { %845 = vmatpush3.bf16.msra.mxu0 %v903_v34  ;;  %451 = vmatprep.mubr.bf16.mxu0 %v911_v40  ;;  %v588_v34 = vld [vmem:[%s1200_s3 + $0x10] sm:$0xff]  ;;  %s956_s3 = smov 112  }
  0x24   :  { %493 = vmatmul.mubr.bf16.vlgmr.msra.gmra.mxu1 %v904_v35  ;;  %846 = vmatprep.subr.bf16.mxu0 %v907_v37 }
  0x25   :  { %500 = vmatprep.mubr.bf16.mxu1 %v914_v42 }
  0x27   :  { %847 = vmatpush3.bf16.msra.mxu0 %v907_v37 }
  0x28   :  { %848 = vmatprep.subr.bf16.mxu0 %v908_v38 }
  0x2a   :  { %452 = vmatmul.mubr.bf16.gmra.mxu0 %v913_v41 }
  0x2b   :  { %849 = vmatpush3.bf16.msra.mxu0 %v908_v38  ;;  %860 = vmatprep.mubr.bf16.mxu0 %v920_v45 }
  0x2c   :  { %850 = vmatprep.subr.bf16.mxu0 %v909_v39  ;;  %501 = vmatmul.mubr.bf16.gmra.mxu1 %v916_v43 }
  0x2f   :  { %851 = vmatpush3.bf16.msra.mxu0 %v909_v39 }
  0x30   :  { %852 = vmatprep.subr.bf16.mxu0 %v910_v44 }
  0x33   :  { %853 = vmatpush3.bf16.msra.mxu0 %v910_v44 }
  0x34   :  { %854 = vmatprep.subr.bf16.mxu0 %v917_v46 }
  0x37   :  { %855 = vmatpush3.bf16.msra.mxu0 %v917_v46 }
  0x38   :  { %856 = vmatprep.subr.bf16.mxu0 %v918_v47 }
  0x3b   :  { %857 = vmatpush3.bf16.msra.mxu0 %v918_v47 }
  0x3c   :  { %858 = vmatprep.subr.bf16.mxu0 %v919_v48 }
  0x3f   :  { %859 = vmatpush3.bf16.msra.mxu0 %v919_v48 }
  0x42   :  { %861 = vmatmul.mubr.bf16.vlgmr.msra.gmra.mxu0 %v921_v49 }
  0xe2   :  { %v794_v50 = vpop.f32.mrf.mxu0 }
  0xe4   :  { %v795_v51 = vpop.f32.mrf.mxu0  ;;  %v822_v52 = vpop.f32.mrf.mxu1 }
  0xe5   :  { %v796_v2 = vadd.f32 %v795_v51, %v794_v50 }
  0xe6   :  { %v797_v53 = vpop.f32.mrf.mxu0  ;;  %v823_v54 = vpop.f32.mrf.mxu1 }
  0xe7   :  { %v446_v8 = vadd.f32 %v796_v2, %v723_v3  ;;  %v824_v9 = vadd.f32 %v823_v54, %v822_v52 }
  0xe8   :  { %v798_v55 = vpop.f32.mrf.mxu0  ;;  %v825_v56 = vpop.f32.mrf.mxu1 }
  0xe9   :  { %v799_v10 = vadd.f32 %v798_v55, %v797_v53  ;;  %v495_v18 = vadd.f32 %v824_v9, %v446_v8 }
  0xea   :  { %v800_v57 = vpop.f32.mrf.mxu0  ;;  %v826_v58 = vpop.f32.mrf.mxu1 }
  0xeb   :  { %v449_v15 = vadd.f32 %v799_v10, %v723_v3  ;;  %v827_v16 = vadd.f32 %v826_v58, %v825_v56 }
  0xec   :  { %v801_v59 = vpop.f32.mrf.mxu0  ;;  %v828_v60 = vpop.f32.mrf.mxu1 }
  0xed   :  { %v802_v63 = vadd.f32 %v801_v59, %v800_v57  ;;  %v498_v24 = vadd.f32 %v827_v16, %v449_v15 }
  0xee   :  { %v803_v61 = vpop.f32.mrf.mxu0  ;;  %v829_v62 = vpop.f32.mrf.mxu1 }
  0xef   :  { %v454_v4 = vadd.f32 %v802_v63, %v723_v3  ;;  %v830_v5 = vadd.f32 %v829_v62, %v828_v60 }
  0xf0   :  { %v804_v0 = vpop.f32.mrf.mxu0  ;;  %v831_v1 = vpop.f32.mrf.mxu1 }
  0xf1   :  { %v805_v6 = vadd.f32 %v804_v0, %v803_v61  ;;  %v503_v13 = vadd.f32 %v830_v5, %v454_v4 }
  0xf2   :  { %v832_v7 = vpop.f32.mrf.mxu1 }
  0xf3   :  { %v457_v11 = vadd.f32 %v805_v6, %v723_v3  ;;  %v833_v12 = vadd.f32 %v832_v7, %v831_v1 }
  0xf5   :  { %v506_v21 = vadd.f32 %v833_v12, %v457_v11 }
 0x102   :  { %v862_v14 = vpop.f32.mrf.mxu0 }
 0x103   :  { %v552_v17 = vadd.f32 %v862_v14, %v503_v13 }
 0x104   :  { %v543_v19 = vpop.f32.mrf.mxu0 }
 0x105   :  { %922 = vtanh.f32 %v552_v17  ;;  %v544_v20 = vadd.f32 %v543_v19, %v495_v18  ;;  %v776_v36 = vmul.f32 -1.442695, %v552_v17 }
 0x106   :  { %v863_v22 = vpop.f32.mrf.mxu0 }
 0x107   :  { %v555_v23 = vadd.f32 %v863_v22, %v506_v21  ;;  %924 = vtanh.f32 %v544_v20  ;;  %v774_v35 = vmul.f32 -1.442695, %v544_v20 }
 0x108   :  { %v546_v25 = vpop.f32.mrf.mxu0 }
 0x109   :  { %v547_v26 = vadd.f32 %v546_v25, %v498_v24  ;;  %926 = vtanh.f32 %v555_v23  ;;  %v777_v38 = vmul.f32 -1.442695, %v555_v23 }
 0x10b   :  { %928 = vtanh.f32 %v547_v26  ;;  %v775_v37 = vmul.f32 -1.442695, %v547_v26 }
 0x10c   :  { %930 = vpow2.f32 %v774_v35 }
 0x10d   :  { %932 = vpow2.f32 %v776_v36 }
 0x10e   :  { %934 = vpow2.f32 %v775_v37 }
 0x10f   :  { %936 = vpow2.f32 %v777_v38 }
 0x112   :  { %v923_v27 = vpop.eup %922 }
 0x113   :  { %618 = vrot.lane.b32.xlu1 %v923_v27, %s954_s2 }
 0x114   :  { %v925_v28 = vpop.eup %924 }
 0x115   :  { %614 = vrot.lane.b32.xlu0 %v925_v28, %s954_s2 }
 0x116   :  { %v927_v29 = vpop.eup %926 }
 0x117   :  { %620 = vrot.lane.b32.xlu1 %v927_v29, %s954_s2 }
 0x118   :  { %v929_v30 = vpop.eup %928 }
 0x119   :  { %616 = vrot.lane.b32.xlu0 %v929_v30, %s954_s2  ;;  %v931_v39 = vpop.eup %930 }
 0x11a   :  { %v933_v40 = vpop.eup %932  ;;  %v570_v41 = vadd.f32 1.0, %v931_v39 }
 0x11b   :  { %596 = vrot.lane.b32.xlu1 %v587_v31, %s955_s22  ;;  %v935_v42 = vpop.eup %934  ;;  %v572_v43 = vadd.f32 1.0, %v933_v40 }
 0x11c   :  { %938 = vrcp.f32 %v570_v41  ;;  %v571_v44 = vadd.f32 1.0, %v935_v42  ;;  %v937_v45 = vpop.eup %936 }
 0x11d   :  { %594 = vrot.lane.b32.xlu0 %v586_v32, %s955_s22  ;;  %940 = vrcp.f32 %v572_v43  ;;  %v573_v46 = vadd.f32 1.0, %v937_v45 }
 0x11e   :  { %942 = vrcp.f32 %v571_v44 }
 0x11f   :  { %600 = vrot.lane.b32.xlu1 %v589_v33, %s955_s22  ;;  %944 = vrcp.f32 %v573_v46 }
 0x121   :  { %598 = vrot.lane.b32.xlu0 %v588_v34, %s955_s22 }
 0x129   :  { %v939_v47 = vpop.eup %938 }
 0x12a   :  { %v941_v51 = vpop.eup %940 }
 0x12b   :  { %v943_v52 = vpop.eup %942 }
 0x12c   :  { %v945_v57 = vpop.eup %944 }
 0x185   :  { %v619_v48 = vpop.permute.xlu1 %618 }
 0x186   :  { %v628_v54 = vmul.f32 %v941_v51, %v619_v48 }
 0x187   :  { %v615_v49 = vpop.permute.xlu0 %614 }
 0x188   :  { %v626_v50 = vmul.f32 %v939_v47, %v615_v49 }
 0x189   :  { %v621_v56 = vpop.permute.xlu1 %620 }
 0x18a   :  { %634 = vrot.lane.b32.xlu0 %v626_v50, %s955_s22  ;;  %v629_v58 = vmul.f32 %v945_v57, %v621_v56 }
 0x18b   :  { %v617_v53 = vpop.permute.xlu0 %616 }
 0x18c   :  { %v627_v55 = vmul.f32 %v943_v52, %v617_v53 }
 0x18d   :  { %v597_v60 = vpop.permute.xlu1 %596 }
 0x18e   :  { %636 = vrot.lane.b32.xlu1 %v627_v55, %s955_s22  ;;  %638 = vrot.lane.b32.xlu0 %v628_v54, %s955_s22  ;;  %v607_v2 = vmul.f32 %v943_v52, %v597_v60 }
 0x18f   :  { %v595_v59 = vpop.permute.xlu0 %594 }
 0x190   :  { %v606_v62 = vmul.f32 %v939_v47, %v595_v59 }
 0x191   :  { %v601_v63 = vpop.permute.xlu1 %600 }
 0x192   :  { %640 = vrot.lane.b32.xlu1 %v629_v58, %s955_s22  ;;  %v609_v8 = vmul.f32 %v945_v57, %v601_v63 }
 0x193   :  { %v599_v61 = vpop.permute.xlu0 %598 }
 0x194   :  { %v608_v3 = vmul.f32 %v941_v51, %v599_v61 }
 0x1fc   :  { %v635_v0 = vpop.permute.xlu0 %634 }
 0x1fd   :  { %v646_v1 = vadd.f32 %v635_v0, %v606_v62 }
 0x1ff   :  { %946 = vtanh.f32 %v646_v1 }
 0x200   :  { %v637_v4 = vpop.permute.xlu1 %636  ;;  %v639_v5 = vpop.permute.xlu0 %638 }
 0x201   :  { %v647_v6 = vadd.f32 %v637_v4, %v607_v2  ;;  %v648_v7 = vadd.f32 %v639_v5, %v608_v3 }
 0x203   :  { %948 = vtanh.f32 %v647_v6 }
 0x204   :  { %950 = vtanh.f32 %v648_v7  ;;  %v641_v9 = vpop.permute.xlu1 %640 }
 0x205   :  { %v649_v10 = vadd.f32 %v641_v9, %v609_v8 }
 0x207   :  { %952 = vtanh.f32 %v649_v10 }
 0x20c   :  { %v947_v11 = vpop.eup %946 }
 0x20d   :  { %658 = vrot.lane.b32.xlu0 %v947_v11, %s955_s22 }
 0x210   :  { %v949_v12 = vpop.eup %948 }
 0x211   :  { %v951_v13 = vpop.eup %950  ;;  %660 = vrot.lane.b32.xlu1 %v949_v12, %s955_s22 }
 0x212   :  { %662 = vrot.lane.b32.xlu0 %v951_v13, %s955_s22 }
 0x214   :  { %v953_v14 = vpop.eup %952 }
 0x215   :  { %664 = vrot.lane.b32.xlu1 %v953_v14, %s955_s22 }
 0x216   :  { %699 = vrot.lane.b32.xlu0 %v646_v1, %s956_s3 }
 0x219   :  { %701 = vrot.lane.b32.xlu1 %v647_v6, %s956_s3 }
 0x27f   :  { %v659_v15 = vpop.permute.xlu0 %658 }
 0x280   :  { %v670_v22 = vmul.f32 %v939_v47, %v659_v15 }
 0x283   :  { %v661_v16 = vpop.permute.xlu1 %660 }
 0x284   :  { %v663_v17 = vpop.permute.xlu0 %662  ;;  %v671_v24 = vmul.f32 %v943_v52, %v661_v16 }
 0x285   :  { %v672_v18 = vmul.f32 %v941_v51, %v663_v17 }
 0x287   :  { %682 = vrot.lane.b32.xlu0 %v672_v18, %s957_s27  ;;  %v665_v19 = vpop.permute.xlu1 %664 }
 0x288   :  { %v673_v20 = vmul.f32 %v945_v57, %v665_v19  ;;  %v700_v21 = vpop.permute.xlu0 %699 }
 0x289   :  { %711 = vst.msk [vmem:[%s1201_s5] sm:$0xff] %vm690_vm0, %v700_v21 }
 0x28a   :  { %684 = vrot.lane.b32.xlu1 %v673_v20, %s957_s27 }
 0x28b   :  { %678 = vrot.lane.b32.xlu0 %v670_v22, %s957_s27  ;;  %v702_v23 = vpop.permute.xlu1 %701 }
 0x28c   :  { %712 = vst.msk [vmem:[%s1201_s5 + $0x8] sm:$0xff] %vm690_vm0, %v702_v23 }
 0x28e   :  { %680 = vrot.lane.b32.xlu1 %v671_v24, %s957_s27 }
 0x28f   :  { %703 = vrot.lane.b32.xlu0 %v648_v7, %s956_s3 }
 0x292   :  { %705 = vrot.lane.b32.xlu1 %v649_v10, %s956_s3 }
 0x2f9   :  { %v683_v25 = vpop.permute.xlu0 %682 }
 0x2fa   :  { %693 = vst.msk [vmem:[%s1202_s4 + $0x10] sm:$0xff] %vm690_vm0, %v683_v25 }
 0x2fc   :  { %v685_v26 = vpop.permute.xlu1 %684 }
 0x2fd   :  { %694 = vst.msk [vmem:[%s1202_s4 + $0x18] sm:$0xff] %vm690_vm0, %v685_v26  ;;  %v679_v27 = vpop.permute.xlu0 %678 }
 0x2fe   :  { %691 = vst.msk [vmem:[%s1202_s4] sm:$0xff] %vm690_vm0, %v679_v27 }
 0x300   :  { %v681_v28 = vpop.permute.xlu1 %680 }
 0x301   :  { %692 = vst.msk [vmem:[%s1202_s4 + $0x8] sm:$0xff] %vm690_vm0, %v681_v28  ;;  %v704_v29 = vpop.permute.xlu0 %703 }
 0x302   :  { %713 = vst.msk [vmem:[%s1201_s5 + $0x10] sm:$0xff] %vm690_vm0, %v704_v29 }
 0x304   :  { %v706_v30 = vpop.permute.xlu1 %705 }
 0x305   :  { %714 = vst.msk [vmem:[%s1201_s5 + $0x18] sm:$0xff] %vm690_vm0, %v706_v30 }

</bundles_post_ra>
